<compile_context>
chip_gen: v7x
topology: tpu7x:2x2x1
jax: 0.10.0
libtpu: 0.0.40
codegen_flags: <defaults>
</compile_context>

<pallas_src>
import math
import functools

import jax
import jax.numpy as jnp
from jax.experimental import pallas as pl
from jax.experimental.pallas import tpu as pltpu


# ----------------------------- helpers ------------------------------------- #

_VMEM_LIMIT = 48 * 1024 * 1024  # below v7x's 64 MiB physical, above the 32 MiB default


def _cparams(dims):
    return pltpu.CompilerParams(dimension_semantics=dims,
                                vmem_limit_bytes=_VMEM_LIMIT)


def _round_up(x, m):
    return ((x + m - 1) // m) * m


def _pick_tile_h(c3, h, w, budget=2 << 20):
    """Row tile for the fused qkv+dwconv kernel.

    Keeps one f32 copy of the (3C, (tile_h+2)*W) slab under `budget` (so the whole
    kernel working set stays well inside v7x's 64 MiB VMEM) and, when row-tiling,
    keeps tile_h*W a multiple of 128 so output stores stay lane-dense."""
    if c3 * (h + 2) * w * 4 <= budget:
        return h
    step = 128 // math.gcd(w, 128)          # smallest tile_h with tile_h*w % 128 == 0
    t = budget // (c3 * w * 4) - 2
    t = (t // step) * step
    if t < step:
        t = step
    if t >= h:
        return h
    return t


def _pick_hw_tile(hwp, cap=4096):
    """Lane tile (multiple of 128 whenever possible) for the flattened spatial axis."""
    if hwp <= cap:
        return hwp
    best = 0
    t = 128
    while t <= cap:
        if hwp % t == 0:
            best = t
        t += 128
    if best:
        return best
    # TODO(synk): for HW with no 128-multiple divisor <= cap, pad the HW axis instead
    # of falling back to a lane-sparse tile.
    for t in range(cap, 0, -1):
        if hwp % t == 0:
            return t
    return hwp


# ----------------------------- kernels ------------------------------------- #

def _qkv_dwconv_kernel(x_ref, wq_ref, bq_ref, wd_ref, bd_ref,
                       vin_ref, vout_ref, cl_ref, cr_ref, o_ref, *, W, M):
    # x:      (1, 1, C, Lp)  haloed input rows, flattened (tile_h+2)*W, lane-padded
    # wq/bq:  (3C, C), (3C, 1)   1x1 conv
    # wd/bd:  (3C, 9), (3C, 1)   3x3 depthwise taps
    # vin:    (1, 1, Lp)  1.0 where the slab position is a real image row
    # vout:   (1, 1, M)   1.0 where the output position is a real image row
    # cl/cr:  (1, Lp)     column masks for dx = -1 / +1 taps
    # o:      (1, 3C, M)  bf16 qkv-after-dwconv, flattened output rows
    lp = x_ref.shape[-1]
    x = x_ref[0, 0].astype(jnp.bfloat16)                          # (C, Lp)
    wq = wq_ref[...].astype(jnp.bfloat16)                         # (3C, C)
    qkv = jnp.dot(wq, x, preferred_element_type=jnp.float32)      # (3C, Lp) f32
    # 1x1-conv bias only on valid (in-image) rows: padded rows must stay exactly 0
    qkv = qkv + bq_ref[...] * vin_ref[0]

    wd = wd_ref[...]                                              # (3C, 9) f32
    cl = cl_ref[...]                                              # (1, Lp)
    cr = cr_ref[...]
    acc = jnp.zeros_like(qkv)
    # 9 taps generated with lane rotations (XLU) + edge masks; no concat copies.
    for dy in (-1, 0, 1):
        for dx in (-1, 0, 1):
            off = (dy + 1) * W + dx          # flattened halo offset; output row r maps
            if off == 0:                     # to slab position r*W (+ one halo row).
                tap = qkv
            else:
                tap = pltpu.roll(qkv, shift=(-off) % lp, axis=1)
            if dx == 1:
                tap = tap * cr
            elif dx == -1:
                tap = tap * cl
            widx = (dy + 1) * 3 + (dx + 1)
            acc = acc + tap * wd[:, widx:widx + 1]

    out = (acc[:, :M] + bd_ref[...]) * vout_ref[0]                # zero padded rows
    o_ref[0] = out.astype(o_ref.dtype)


def _gram_softmax_fold_kernel(temp_ref, hm_ref, wp_ref, q_ref, k_ref, m_ref,
                              s_acc, qq_acc, kk_acc):
    # Pass 1: stream HW tiles, accumulate full (C,C) Gram (MXU) + |q|^2/|k|^2 (VPU).
    # Epilogue: normalize, per-head temperature, block-diag masked softmax, fold
    # project_out into M = W_proj @ blockdiag(attn).
    ti = pl.program_id(1)

    @pl.when(ti == 0)
    def _():
        s_acc[...] = jnp.zeros_like(s_acc)
        qq_acc[...] = jnp.zeros_like(qq_acc)
        kk_acc[...] = jnp.zeros_like(kk_acc)

    q = q_ref[0, 0]                                               # (C, T) bf16
    k = k_ref[0, 0]
    qf = q.astype(jnp.float32)
    kf = k.astype(jnp.float32)
    qq_acc[...] += jnp.sum(qf * qf, axis=-1, keepdims=True)       # (C, 1)
    kk_acc[...] += jnp.sum(kf * kf, axis=-1, keepdims=True)
    s_acc[...] += jax.lax.dot_general(q, k, (((1,), (1,)), ((), ())),
                                      preferred_element_type=jnp.float32)

    @pl.when(ti == pl.num_programs(1) - 1)
    def _():
        C = wp_ref.shape[0]
        eps2 = jnp.float32(1e-24)            # matches F.normalize eps=1e-12 on the norm
        inv_q = jax.lax.rsqrt(jnp.maximum(qq_acc[...], eps2))     # (C, 1)
        inv_k = jax.lax.rsqrt(jnp.maximum(kk_acc[...], eps2))     # (C, 1)
        row = jax.lax.broadcasted_iota(jnp.int32, (C, C), 0)
        col = jax.lax.broadcasted_iota(jnp.int32, (C, C), 1)
        eye = row == col
        # move inv_k to a (1, C) row via a tiny masked reduction (no relayout risk)
        inv_k_row = jnp.sum(jnp.where(eye, inv_k, 0.0), axis=0, keepdims=True)
        logits = s_acc[...] * inv_q * inv_k_row * temp_ref[...]   # VPU broadcasts only
        logits = jnp.where(hm_ref[...] > 0.0, logits, jnp.float32(-1e30))
        logits = logits - jnp.max(logits, axis=-1, keepdims=True)
        p = jnp.exp(logits)
        p = p * pl.reciprocal(jnp.sum(p, axis=-1, keepdims=True), approx=True)
        m_ref[0] = jnp.dot(wp_ref[...].astype(jnp.bfloat16), p.astype(jnp.bfloat16),
                           preferred_element_type=jnp.float32)    # (C, C)


def _attn_apply_proj_kernel(m_ref, bp_ref, v_ref, o_ref):
    # Pass 2: out_tile = (W_proj @ attn) @ v_tile + b_proj  -- single full-C matmul.
    m = m_ref[0].astype(jnp.bfloat16)                             # (C, C)
    v = v_ref[0, 0]                                               # (C, T) bf16
    o = jnp.dot(m, v, preferred_element_type=jnp.float32) + bp_ref[...]
    o_ref[0] = o.astype(o_ref.dtype)


# ----------------------------- full module --------------------------------- #

def init_attention_params(key, dim, num_heads, dtype=jnp.float32):
    k1, k2, k3, k4, k5, k6 = jax.random.split(key, 6)
    return {
        "temperature": jnp.ones((num_heads, 1, 1), dtype),            # torch.ones init
        "w_qkv": 0.1 * jax.random.normal(k1, (3 * dim, dim), dtype),  # Conv2d 1x1
        "b_qkv": 0.1 * jax.random.normal(k2, (3 * dim,), dtype),
        "w_dw": 0.1 * jax.random.normal(k3, (3 * dim, 3, 3), dtype),  # depthwise 3x3
        "b_dw": 0.1 * jax.random.normal(k4, (3 * dim,), dtype),
        "w_proj": 0.1 * jax.random.normal(k5, (dim, dim), dtype),     # Conv2d 1x1
        "b_proj": 0.1 * jax.random.normal(k6, (dim,), dtype),
    }


def attention_forward(x, params, num_heads, *, tile_h=None, hw_tile=None):
    # x: (B, C, H, W) NCHW, matching the PyTorch module.
    B, C, H, W = x.shape
    assert C % num_heads == 0
    cp = C // num_heads
    C3 = 3 * C

    # ---------------- stage 1: fused 1x1 qkv conv + 3x3 depthwise conv -------
    if tile_h is None:
        tile_h = _pick_tile_h(C3, H, W)
    tile_h = min(tile_h, H)
    n_rt = (H + tile_h - 1) // tile_h
    H_pad = n_rt * tile_h
    if n_rt > 1:
        assert (tile_h * W) % 128 == 0, "row tile must keep tile_h*W lane aligned"
    HWp = H_pad * W
    M = tile_h * W
    L = (tile_h + 2) * W
    Lp = _round_up(L, 128)

    # haloed row tiles of x (small tensor; halo copy is cheap vs. the 3C slab)
    x_pad = jnp.pad(x, ((0, 0), (0, 0), (1, H_pad - H + 1), (0, 0)))
    if n_rt == 1:
        x_halo = x_pad[:, None]
    else:
        x_halo = jnp.stack(
            [x_pad[:, :, i * tile_h:i * tile_h + tile_h + 2, :] for i in range(n_rt)],
            axis=1)
    x_halo = x_halo.reshape(B, n_rt, C, L)
    if Lp != L:
        x_halo = jnp.pad(x_halo, ((0, 0), (0, 0), (0, 0), (0, Lp - L)))

    # precomputed edge / validity masks (avoid in-kernel integer div/mod)
    pos = jnp.arange(Lp)
    in_image = pos < L
    row_in = pos // W
    col_in = pos % W
    rt = jnp.arange(n_rt)[:, None]
    grow = rt * tile_h + row_in[None, :] - 1
    vin = ((grow >= 0) & (grow < H) & in_image[None, :]).astype(jnp.float32)
    vin = vin.reshape(n_rt, 1, Lp)
    cl = ((col_in >= 1) & in_image).astype(jnp.float32).reshape(1, Lp)
    cr = ((col_in <= W - 2) & in_image).astype(jnp.float32).reshape(1, Lp)
    opos = jnp.arange(M)
    vout = ((rt * tile_h + opos[None, :] // W) < H).astype(jnp.float32)
    vout = vout.reshape(n_rt, 1, M)

    conv_kernel = functools.partial(_qkv_dwconv_kernel, W=W, M=M)
    qkv_flat = pl.pallas_call(
        conv_kernel,
        out_shape=jax.ShapeDtypeStruct((B, C3, HWp), jnp.bfloat16),  # bf16 slab: halves
        grid=(B, n_rt),                                              # dominant HBM traffic
        in_specs=[
            pl.BlockSpec((1, 1, C, Lp), lambda b, r: (b, r, 0, 0)),
            pl.BlockSpec((C3, C), lambda b, r: (0, 0)),
            pl.BlockSpec((C3, 1), lambda b, r: (0, 0)),
            pl.BlockSpec((C3, 9), lambda b, r: (0, 0)),
            pl.BlockSpec((C3, 1), lambda b, r: (0, 0)),
            pl.BlockSpec((1, 1, Lp), lambda b, r: (r, 0, 0)),
            pl.BlockSpec((1, 1, M), lambda b, r: (r, 0, 0)),
            pl.BlockSpec((1, Lp), lambda b, r: (0, 0)),
            pl.BlockSpec((1, Lp), lambda b, r: (0, 0)),
        ],
        out_specs=pl.BlockSpec((1, C3, M), lambda b, r: (b, 0, r)),
        compiler_params=_cparams(("parallel", "parallel")),
    )(x_halo,
      params["w_qkv"], params["b_qkv"].reshape(C3, 1),
      params["w_dw"].reshape(C3, 9), params["b_dw"].reshape(C3, 1),
      vin, vout, cl, cr)

    # q/k/v indexed straight out of the single bf16 slab via BlockSpec (no split copies)
    slab = qkv_flat.reshape(B, 3, C, HWp)

    # ---------------- stage 2: pass 1 (Gram + softmax + W_proj fold) ---------
    if hw_tile is None:
        hw_tile = _pick_hw_tile(HWp)
    assert HWp % hw_tile == 0
    n_t = HWp // hw_tile

    temp_full = jnp.repeat(params["temperature"].reshape(num_heads).astype(jnp.float32),
                           cp).reshape(C, 1)
    head_id = jnp.arange(C) // cp
    head_mask = (head_id[:, None] == head_id[None, :]).astype(jnp.float32)

    m_fold = pl.pallas_call(
        _gram_softmax_fold_kernel,
        out_shape=jax.ShapeDtypeStruct((B, C, C), jnp.float32),
        grid=(B, n_t),
        in_specs=[
            pl.BlockSpec((C, 1), lambda b, t: (0, 0)),               # temperature (per ch)
            pl.BlockSpec((C, C), lambda b, t: (0, 0)),               # head block mask
            pl.BlockSpec((C, C), lambda b, t: (0, 0)),               # W_proj
            pl.BlockSpec((1, 1, C, hw_tile), lambda b, t: (b, 0, 0, t)),   # q
            pl.BlockSpec((1, 1, C, hw_tile), lambda b, t: (b, 1, 0, t)),   # k
        ],
        out_specs=pl.BlockSpec((1, C, C), lambda b, t: (b, 0, 0)),
        scratch_shapes=[
            pltpu.VMEM((C, C), jnp.float32),
            pltpu.VMEM((C, 1), jnp.float32),
            pltpu.VMEM((C, 1), jnp.float32),
        ],
        compiler_params=_cparams(("parallel", "arbitrary")),
    )(temp_full, head_mask, params["w_proj"].astype(jnp.float32), slab, slab)

    # ---------------- stage 3: pass 2 (apply folded matrix to v) -------------
    out = pl.pallas_call(
        _attn_apply_proj_kernel,
        out_shape=jax.ShapeDtypeStruct((B, C, HWp), x.dtype),
        grid=(B, n_t),
        in_specs=[
            pl.BlockSpec((1, C, C), lambda b, t: (b, 0, 0)),
            pl.BlockSpec((C, 1), lambda b, t: (0, 0)),
            pl.BlockSpec((1, 1, C, hw_tile), lambda b, t: (b, 2, 0, t)),   # v
        ],
        out_specs=pl.BlockSpec((1, C, hw_tile), lambda b, t: (b, 0, t)),
        compiler_params=_cparams(("parallel", "parallel")),
    )(m_fold, params["b_proj"].reshape(C, 1).astype(jnp.float32), slab)

    out = out.reshape(B, C, H_pad, W)
    if H_pad != H:
        out = out[:, :, :H, :]
    return out


# ----------------------------- pure-JAX reference --------------------------- #

def attention_reference(x, params, num_heads):
    B, C, H, W = x.shape
    HW = H * W
    xf = x.reshape(B, C, HW)
    qkv = jnp.einsum("oc,bcn->bon", params["w_qkv"], xf) + params["b_qkv"][None, :, None]
    qkv = qkv.reshape(B, 3 * C, H, W)
    xp = jnp.pad(qkv, ((0, 0), (0, 0), (1, 1), (1, 1)))
    dw = jnp.zeros_like(qkv)
    for dy in range(3):
        for dx in range(3):
            dw = dw + xp[:, :, dy:dy + H, dx:dx + W] * params["w_dw"][None, :, dy, dx, None, None]
    dw = dw + params["b_dw"][None, :, None, None]
    q, k, v = jnp.split(dw.reshape(B, 3 * C, HW), 3, axis=1)
    cp = C // num_heads
    q = q.reshape(B, num_heads, cp, HW)
    k = k.reshape(B, num_heads, cp, HW)
    v = v.reshape(B, num_heads, cp, HW)
    qn = q / jnp.maximum(jnp.linalg.norm(q, axis=-1, keepdims=True), 1e-12)
    kn = k / jnp.maximum(jnp.linalg.norm(k, axis=-1, keepdims=True), 1e-12)
    attn = jnp.einsum("bhcn,bhdn->bhcd", qn, kn) * params["temperature"][None]
    attn = jax.nn.softmax(attn, axis=-1)
    o = jnp.einsum("bhcd,bhdn->bhcn", attn, v).reshape(B, C, HW)
    o = jnp.einsum("oc,bcn->bon", params["w_proj"], o) + params["b_proj"][None, :, None]
    return o.reshape(B, C, H, W)


# ----------------------------- main ----------------------------------------- #

if __name__ == "__main__":
    B, dim, num_heads, H, W = 2, 4, 2, 16, 16

    key = jax.random.PRNGKey(0)
    kx, kp = jax.random.split(key)
    x = jax.random.normal(kx, (B, dim, H, W), jnp.float32)
    params = init_attention_params(kp, dim, num_heads)

    ref = jax.block_until_ready(attention_reference(x, params, num_heads))

    # default (auto) tiling
    out = jax.block_until_ready(attention_forward(x, params, num_heads))
    assert out.shape == (B, dim, H, W)
    err = float(jnp.max(jnp.abs(out - ref)))
    # bf16 MXU operands / bf16 qkv slab (f32 accumulation) vs the pure-f32 reference.
    assert jnp.allclose(out, ref, rtol=2e-2, atol=2e-2), err

    # forced small tiles: exercises the halo row-tiling and multi-tile HW streaming paths
    out2 = jax.block_until_ready(
        attention_forward(x, params, num_heads, tile_h=8, hw_tile=128))
    err2 = float(jnp.max(jnp.abs(out2 - ref)))
    assert jnp.allclose(out2, ref, rtol=2e-2, atol=2e-2), err2

    print("KERNEL_OK")
</pallas_src>

<mosaic_0001>
module attributes {stable_mosaic.version = 11 : i64} {
  func.func @_qkv_dwconv_kernel(%arg0: i32, %arg1: i32, %arg2: memref<1x1x4x384xf32, #tpu.memory_space<vmem>>, %arg3: memref<12x4xf32, #tpu.memory_space<vmem>>, %arg4: memref<12x1xf32, #tpu.memory_space<vmem>>, %arg5: memref<12x9xf32, #tpu.memory_space<vmem>>, %arg6: memref<12x1xf32, #tpu.memory_space<vmem>>, %arg7: memref<1x1x384xf32, #tpu.memory_space<vmem>>, %arg8: memref<1x1x256xf32, #tpu.memory_space<vmem>>, %arg9: memref<1x384xf32, #tpu.memory_space<vmem>>, %arg10: memref<1x384xf32, #tpu.memory_space<vmem>>, %arg11: memref<1x12x256xbf16, #tpu.memory_space<vmem>>) attributes {dimension_semantics = [#tpu.dimension_semantics<parallel>, #tpu.dimension_semantics<parallel>], iteration_bounds = array<i64: 2, 1>, scalar_prefetch = 0 : i64, scratch_operands = 0 : i64, tpu.core_type = #tpu.core_type<tc>, window_params = [{transform_indices = @transform_0, window_bounds = array<i64: 1, 1, 4, 384>}, {pipeline_mode = #tpu.pipeline_mode<synchronous>, transform_indices = @transform_1, window_bounds = array<i64: 12, 4>}, {pipeline_mode = #tpu.pipeline_mode<synchronous>, transform_indices = @transform_2, window_bounds = array<i64: 12, 1>}, {pipeline_mode = #tpu.pipeline_mode<synchronous>, transform_indices = @transform_3, window_bounds = array<i64: 12, 9>}, {pipeline_mode = #tpu.pipeline_mode<synchronous>, transform_indices = @transform_4, window_bounds = array<i64: 12, 1>}, {transform_indices = @transform_5, window_bounds = array<i64: 1, 1, 384>}, {transform_indices = @transform_6, window_bounds = array<i64: 1, 1, 256>}, {pipeline_mode = #tpu.pipeline_mode<synchronous>, transform_indices = @transform_7, window_bounds = array<i64: 1, 384>}, {pipeline_mode = #tpu.pipeline_mode<synchronous>, transform_indices = @transform_8, window_bounds = array<i64: 1, 384>}, {transform_indices = @transform_9, window_bounds = array<i64: 1, 12, 256>}]} {
    %c0 = arith.constant 0 : index
    %c0_0 = arith.constant 0 : index
    %c0_1 = arith.constant 0 : index
    %c0_2 = arith.constant 0 : index
    %0 = vector.load %arg2[%c0, %c0_0, %c0_1, %c0_2] : memref<1x1x4x384xf32, #tpu.memory_space<vmem>>, vector<1x1x4x384xf32>
    %1 = vector.shape_cast %0 : vector<1x1x4x384xf32> to vector<4x384xf32>
    %2 = arith.truncf %1 : vector<4x384xf32> to vector<4x384xbf16>
    %c0_3 = arith.constant 0 : index
    %c0_4 = arith.constant 0 : index
    %3 = vector.load %arg3[%c0_3, %c0_4] : memref<12x4xf32, #tpu.memory_space<vmem>>, vector<12x4xf32>
    %4 = arith.truncf %3 : vector<12x4xf32> to vector<12x4xbf16>
    %cst = arith.constant dense<0.000000e+00> : vector<12x384xf32>
    %5 = tpu.matmul %4, %2, %cst {dimension_numbers = #tpu.dot_dimension_numbers<[1], [0], [0], [1], [0, 0, 1, 1], [], []>} : vector<12x4xbf16>, vector<4x384xbf16>, vector<12x384xf32> -> vector<12x384xf32>
    %c0_5 = arith.constant 0 : index
    %c0_6 = arith.constant 0 : index
    %6 = vector.load %arg4[%c0_5, %c0_6] : memref<12x1xf32, #tpu.memory_space<vmem>>, vector<12x1xf32>
    %c0_7 = arith.constant 0 : index
    %c0_8 = arith.constant 0 : index
    %c0_9 = arith.constant 0 : index
    %7 = vector.load %arg7[%c0_7, %c0_8, %c0_9] : memref<1x1x384xf32, #tpu.memory_space<vmem>>, vector<1x1x384xf32>
    %8 = vector.shape_cast %7 : vector<1x1x384xf32> to vector<1x384xf32>
    %9 = vector.broadcast %6 : vector<12x1xf32> to vector<12x384xf32>
    %10 = vector.broadcast %8 : vector<1x384xf32> to vector<12x384xf32>
    %11 = arith.mulf %9, %10 : vector<12x384xf32>
    %12 = arith.addf %5, %11 : vector<12x384xf32>
    %c0_10 = arith.constant 0 : index
    %c0_11 = arith.constant 0 : index
    %13 = vector.load %arg5[%c0_10, %c0_11] : memref<12x9xf32, #tpu.memory_space<vmem>>, vector<12x9xf32>
    %c0_12 = arith.constant 0 : index
    %c0_13 = arith.constant 0 : index
    %14 = vector.load %arg9[%c0_12, %c0_13] : memref<1x384xf32, #tpu.memory_space<vmem>>, vector<1x384xf32>
    %c0_14 = arith.constant 0 : index
    %c0_15 = arith.constant 0 : index
    %15 = vector.load %arg10[%c0_14, %c0_15] : memref<1x384xf32, #tpu.memory_space<vmem>>, vector<1x384xf32>
    %cst_16 = arith.constant 0.000000e+00 : f32
    %16 = vector.broadcast %cst_16 : f32 to vector<12x384xf32>
    %c1_i32 = arith.constant 1 : i32
    %17 = tpu.dynamic_rotate %12 by %c1_i32 dim 1 : vector<12x384xf32>, i32 -> vector<12x384xf32>
    %18 = vector.broadcast %14 : vector<1x384xf32> to vector<12x384xf32>
    %19 = arith.mulf %17, %18 : vector<12x384xf32>
    %20 = vector.extract_strided_slice %13 {offsets = [0, 0], sizes = [12, 1], strides = [1, 1]} : vector<12x9xf32> to vector<12x1xf32>
    %21 = vector.broadcast %20 : vector<12x1xf32> to vector<12x384xf32>
    %22 = arith.mulf %19, %21 : vector<12x384xf32>
    %23 = arith.addf %16, %22 : vector<12x384xf32>
    %24 = vector.extract_strided_slice %13 {offsets = [0, 1], sizes = [12, 1], strides = [1, 1]} : vector<12x9xf32> to vector<12x1xf32>
    %25 = vector.broadcast %24 : vector<12x1xf32> to vector<12x384xf32>
    %26 = arith.mulf %12, %25 : vector<12x384xf32>
    %27 = arith.addf %23, %26 : vector<12x384xf32>
    %c383_i32 = arith.constant 383 : i32
    %28 = tpu.dynamic_rotate %12 by %c383_i32 dim 1 : vector<12x384xf32>, i32 -> vector<12x384xf32>
    %29 = vector.broadcast %15 : vector<1x384xf32> to vector<12x384xf32>
    %30 = arith.mulf %28, %29 : vector<12x384xf32>
    %31 = vector.extract_strided_slice %13 {offsets = [0, 2], sizes = [12, 1], strides = [1, 1]} : vector<12x9xf32> to vector<12x1xf32>
    %32 = vector.broadcast %31 : vector<12x1xf32> to vector<12x384xf32>
    %33 = arith.mulf %30, %32 : vector<12x384xf32>
    %34 = arith.addf %27, %33 : vector<12x384xf32>
    %c369_i32 = arith.constant 369 : i32
    %35 = tpu.dynamic_rotate %12 by %c369_i32 dim 1 : vector<12x384xf32>, i32 -> vector<12x384xf32>
    %36 = vector.broadcast %14 : vector<1x384xf32> to vector<12x384xf32>
    %37 = arith.mulf %35, %36 : vector<12x384xf32>
    %38 = vector.extract_strided_slice %13 {offsets = [0, 3], sizes = [12, 1], strides = [1, 1]} : vector<12x9xf32> to vector<12x1xf32>
    %39 = vector.broadcast %38 : vector<12x1xf32> to vector<12x384xf32>
    %40 = arith.mulf %37, %39 : vector<12x384xf32>
    %41 = arith.addf %34, %40 : vector<12x384xf32>
    %c368_i32 = arith.constant 368 : i32
    %42 = tpu.dynamic_rotate %12 by %c368_i32 dim 1 : vector<12x384xf32>, i32 -> vector<12x384xf32>
    %43 = vector.extract_strided_slice %13 {offsets = [0, 4], sizes = [12, 1], strides = [1, 1]} : vector<12x9xf32> to vector<12x1xf32>
    %44 = vector.broadcast %43 : vector<12x1xf32> to vector<12x384xf32>
    %45 = arith.mulf %42, %44 : vector<12x384xf32>
    %46 = arith.addf %41, %45 : vector<12x384xf32>
    %c367_i32 = arith.constant 367 : i32
    %47 = tpu.dynamic_rotate %12 by %c367_i32 dim 1 : vector<12x384xf32>, i32 -> vector<12x384xf32>
    %48 = vector.broadcast %15 : vector<1x384xf32> to vector<12x384xf32>
    %49 = arith.mulf %47, %48 : vector<12x384xf32>
    %50 = vector.extract_strided_slice %13 {offsets = [0, 5], sizes = [12, 1], strides = [1, 1]} : vector<12x9xf32> to vector<12x1xf32>
    %51 = vector.broadcast %50 : vector<12x1xf32> to vector<12x384xf32>
    %52 = arith.mulf %49, %51 : vector<12x384xf32>
    %53 = arith.addf %46, %52 : vector<12x384xf32>
    %c353_i32 = arith.constant 353 : i32
    %54 = tpu.dynamic_rotate %12 by %c353_i32 dim 1 : vector<12x384xf32>, i32 -> vector<12x384xf32>
    %55 = vector.broadcast %14 : vector<1x384xf32> to vector<12x384xf32>
    %56 = arith.mulf %54, %55 : vector<12x384xf32>
    %57 = vector.extract_strided_slice %13 {offsets = [0, 6], sizes = [12, 1], strides = [1, 1]} : vector<12x9xf32> to vector<12x1xf32>
    %58 = vector.broadcast %57 : vector<12x1xf32> to vector<12x384xf32>
    %59 = arith.mulf %56, %58 : vector<12x384xf32>
    %60 = arith.addf %53, %59 : vector<12x384xf32>
    %c352_i32 = arith.constant 352 : i32
    %61 = tpu.dynamic_rotate %12 by %c352_i32 dim 1 : vector<12x384xf32>, i32 -> vector<12x384xf32>
    %62 = vector.extract_strided_slice %13 {offsets = [0, 7], sizes = [12, 1], strides = [1, 1]} : vector<12x9xf32> to vector<12x1xf32>
    %63 = vector.broadcast %62 : vector<12x1xf32> to vector<12x384xf32>
    %64 = arith.mulf %61, %63 : vector<12x384xf32>
    %65 = arith.addf %60, %64 : vector<12x384xf32>
    %c351_i32 = arith.constant 351 : i32
    %66 = tpu.dynamic_rotate %12 by %c351_i32 dim 1 : vector<12x384xf32>, i32 -> vector<12x384xf32>
    %67 = vector.broadcast %15 : vector<1x384xf32> to vector<12x384xf32>
    %68 = arith.mulf %66, %67 : vector<12x384xf32>
    %69 = vector.extract_strided_slice %13 {offsets = [0, 8], sizes = [12, 1], strides = [1, 1]} : vector<12x9xf32> to vector<12x1xf32>
    %70 = vector.broadcast %69 : vector<12x1xf32> to vector<12x384xf32>
    %71 = arith.mulf %68, %70 : vector<12x384xf32>
    %72 = arith.addf %65, %71 : vector<12x384xf32>
    %73 = vector.extract_strided_slice %72 {offsets = [0, 0], sizes = [12, 256], strides = [1, 1]} : vector<12x384xf32> to vector<12x256xf32>
    %c0_17 = arith.constant 0 : index
    %c0_18 = arith.constant 0 : index
    %74 = vector.load %arg6[%c0_17, %c0_18] : memref<12x1xf32, #tpu.memory_space<vmem>>, vector<12x1xf32>
    %75 = vector.broadcast %74 : vector<12x1xf32> to vector<12x256xf32>
    %76 = arith.addf %73, %75 : vector<12x256xf32>
    %c0_19 = arith.constant 0 : index
    %c0_20 = arith.constant 0 : index
    %c0_21 = arith.constant 0 : index
    %77 = vector.load %arg8[%c0_19, %c0_20, %c0_21] : memref<1x1x256xf32, #tpu.memory_space<vmem>>, vector<1x1x256xf32>
    %78 = vector.shape_cast %77 : vector<1x1x256xf32> to vector<1x256xf32>
    %79 = vector.broadcast %78 : vector<1x256xf32> to vector<12x256xf32>
    %80 = arith.mulf %76, %79 : vector<12x256xf32>
    %81 = arith.truncf %80 : vector<12x256xf32> to vector<12x256xbf16>
    %c0_22 = arith.constant 0 : index
    %c0_23 = arith.constant 0 : index
    %c0_24 = arith.constant 0 : index
    %82 = vector.load %arg11[%c0_22, %c0_23, %c0_24] : memref<1x12x256xbf16, #tpu.memory_space<vmem>>, vector<1x12x256xbf16>
    %83 = vector.shape_cast %82 : vector<1x12x256xbf16> to vector<12x256xbf16>
    %84 = vector.shape_cast %81 : vector<12x256xbf16> to vector<1x12x256xbf16>
    tpu.vector_store %arg11[%c0_22, %c0_23, %c0_24], %84 {strides = array<i32>} : memref<1x12x256xbf16, #tpu.memory_space<vmem>>, vector<1x12x256xbf16>,
    return
  }
  func.func @transform_0(%arg0: i32, %arg1: i32) -> (i32, i32, i32, i32) {
    %c0_i32 = arith.constant 0 : i32
    %c0_i32_0 = arith.constant 0 : i32
    %c0_i32_1 = arith.constant 0 : i32
    return %arg0, %arg1, %c0_i32, %c0_i32_0 : i32, i32, i32, i32
  }
  func.func @transform_1(%arg0: i32, %arg1: i32) -> (i32, i32) {
    %c0_i32 = arith.constant 0 : i32
    %c0_i32_0 = arith.constant 0 : i32
    %c0_i32_1 = arith.constant 0 : i32
    return %c0_i32, %c0_i32_0 : i32, i32
  }
  func.func @transform_2(%arg0: i32, %arg1: i32) -> (i32, i32) {
    %c0_i32 = arith.constant 0 : i32
    %c0_i32_0 = arith.constant 0 : i32
    %c0_i32_1 = arith.constant 0 : i32
    return %c0_i32, %c0_i32_0 : i32, i32
  }
  func.func @transform_3(%arg0: i32, %arg1: i32) -> (i32, i32) {
    %c0_i32 = arith.constant 0 : i32
    %c0_i32_0 = arith.constant 0 : i32
    %c0_i32_1 = arith.constant 0 : i32
    return %c0_i32, %c0_i32_0 : i32, i32
  }
  func.func @transform_4(%arg0: i32, %arg1: i32) -> (i32, i32) {
    %c0_i32 = arith.constant 0 : i32
    %c0_i32_0 = arith.constant 0 : i32
    %c0_i32_1 = arith.constant 0 : i32
    return %c0_i32, %c0_i32_0 : i32, i32
  }
  func.func @transform_5(%arg0: i32, %arg1: i32) -> (i32, i32, i32) {
    %c0_i32 = arith.constant 0 : i32
    %c0_i32_0 = arith.constant 0 : i32
    %c0_i32_1 = arith.constant 0 : i32
    return %arg1, %c0_i32, %c0_i32_0 : i32, i32, i32
  }
  func.func @transform_6(%arg0: i32, %arg1: i32) -> (i32, i32, i32) {
    %c0_i32 = arith.constant 0 : i32
    %c0_i32_0 = arith.constant 0 : i32
    %c0_i32_1 = arith.constant 0 : i32
    return %arg1, %c0_i32, %c0_i32_0 : i32, i32, i32
  }
  func.func @transform_7(%arg0: i32, %arg1: i32) -> (i32, i32) {
    %c0_i32 = arith.constant 0 : i32
    %c0_i32_0 = arith.constant 0 : i32
    %c0_i32_1 = arith.constant 0 : i32
    return %c0_i32, %c0_i32_0 : i32, i32
  }
  func.func @transform_8(%arg0: i32, %arg1: i32) -> (i32, i32) {
    %c0_i32 = arith.constant 0 : i32
    %c0_i32_0 = arith.constant 0 : i32
    %c0_i32_1 = arith.constant 0 : i32
    return %c0_i32, %c0_i32_0 : i32, i32
  }
  func.func @transform_9(%arg0: i32, %arg1: i32) -> (i32, i32, i32) {
    %c0_i32 = arith.constant 0 : i32
    %c0_i32_0 = arith.constant 0 : i32
    return %arg0, %c0_i32, %arg1 : i32, i32, i32
  }
}

</mosaic_0001>

<bundles_post_ra>
// kernel: tpu_custom_call.1
= control target key start
LH: loop header
LB: loop body
LE: loop exit
PB: predicated region body
PF: predicated region fallthrough
CT: control target
= control target key end

     0   :  { %s1234_s30 = smov 0   ;;  %s1236_s10 = smov 0   ;;  %s1688_s0 = inlined_call_operand.vmem [shape: f32[2,1,4,384], index: 0, kind: input, shape index: {}]   ;;  %s1689_s1 = inlined_call_operand.vmem [shape: f32[12,4], index: 1, kind: input, shape index: {}]   ;;  %s1690_s2 = inlined_call_operand.vmem [shape: f32[12,1], index: 2, kind: input, shape index: {}]   ;;  %s1691_s3 = inlined_call_operand.vmem [shape: f32[12,9], index: 3, kind: input, shape index: {}]   ;;  %s1692_s4 = inlined_call_operand.vmem [shape: f32[12,1], index: 4, kind: input, shape index: {}]   ;;  %s1693_s5 = inlined_call_operand.vmem [shape: f32[1,1,384], index: 5, kind: input, shape index: {}]   ;;  %s1694_s6 = inlined_call_operand.vmem [shape: f32[1,1,256], index: 6, kind: input, shape index: {}]   ;;  %s1695_s7 = inlined_call_operand.vmem [shape: f32[1,384], index: 7, kind: input, shape index: {}]   ;;  %s1696_s8 = inlined_call_operand.vmem [shape: f32[1,384], index: 8, kind: input, shape index: {}]   ;;  %s1697_s9 = inlined_call_operand.vmem [shape: bf16[2,12,256], index: 9, kind: output, shape index: {}]  }
   0x1   :  { %s1238_s11 = smov 0  }
   0x2 LB: > { %s31_s12 = sadd.s32 1, %s1159_s10  ;;  %p1055_p0 = scmp.ge.s32.totalorder %s1163_s11, 1  ;;  %s1163_s11 = sphi %s1238_s11, %s19_s11   ;;  %s1159_s10 = sphi %s1236_s10, %s1702_s10   ;;  %s1155_s30 = sphi %s1234_s30, %s1701_s30  }
   0x3   : > { %p33_p1 = scmp.ge.s32.totalorder %s31_s12, 2  ;;  %p325_p2 = scmp.lt.s32.totalorder %s1163_s11, 3 }
   0x5   : > { %s1704_s12 = smov (%p33_p1, %s31_s12), 0  ;;  %p326_p3 = pnand %p1055_p0, %p325_p2 }
   0x7   : > { %329 = sbr.rel (%p326_p3) target bundleno = 492 (0x1ec), region = 56 }
   0xe   : > { %p377_p4 = scmp.lt.s32.totalorder %s1155_s30, 1  ;;  %v1165_v0 = vmov 0.0   ;;  %vm1166_vm0 = vmmov 0   ;;  %v1255_v1 = vld [vmem:[%s1691_s3] sm:$0xff]  ;;  %v1167_v2 = vmov 0   ;;  %v1168_v3 = vmov 1  }
   0xf   : > { %1071 = vmatprep.subr.bf16.mxu1 %v1165_v0  ;;  %1073 = vmatprep.mubr.msk.bf16.mxu1 %vm1166_vm0, %v1165_v0  ;;  %v550_v4 = vld [vmem:[%s1691_s3 + $0x8] sm:$0xf]  ;;  %v413_v5 = vld [vmem:[%s1689_s1] sm:$0xff]  ;;  %vm455_vm1 = vcmask 1041408   ;;  %v1169_v9 = vmov 2   ;;  %vm451_vm2 = vcmask 31744   ;;  %v430_v31 = vlaneseq }
  0x10   : > { %s1706_s30 = smov (!%p377_p4, %s1155_s30), 1  ;;  %497 = vmatprep.mubr.bf16.mxu0 %v1167_v2  ;;  %1122 = vset.pattern.permute.xlu0 %v1168_v3  ;;  %v414_v8 = vld [vmem:[%s1689_s1 + $0x8] sm:$0xf]  ;;  %v1170_v17 = vmov 3   ;;  %v1171_v18 = vmov 4   ;;  %v1172_v19 = vmov 5  }
  0x11   : > { %606 = vperm.xlu0 %1122, %v1255_v1   ;;  %1121 = vset.pattern.permute.xlu1 %v1167_v2  ;;  %s1077_s17 = smul.u32 12, %s1706_s30  ;;  %v415_v16 = vpack.c.bf16 %v414_v8, %v413_v5  ;;  %v1173_v20 = vmov 6   ;;  %v1174_v21 = vmov 7   ;;  %v1175_v22 = vmov 8   ;;  %v416_v23 = vld [vmem:[%s1690_s2] sm:$0xff]  ;;  %s1176_s14 = smov 127  }
  0x12   : > { %594 = vperm.xlu1 %1121, %v550_v4   ;;  %v417_v24 = vld [vmem:[%s1690_s2 + $0x8] sm:$0xf]  ;;  %v431_v33 = vshrl.u32 %v430_v31, 7  ;;  %v418_v36 = vld [vmem:[%s1693_s5] sm:$0x7]  ;;  %s1177_s15 = smov 1  }
  0x13   : > { %s385_s20 = scalar_lea.vmem %s1688_s0, %s1077_s17  ;;  %s1178_s16 = smov 112  }
  0x14   : > { %v406_v6 = vld [vmem:[%s385_s20 + $0x8] sm:$0xf]  ;;  %v405_v7 = vld [vmem:[%s385_s20] sm:$0xff]  ;;  %v440_v34 = vsub.s32 2, %v431_v33  ;;  %v1316_v49 = vsub.s32 0, %v431_v33  ;;  %s1179_s17 = smov 113  }
  0x15   : > { %1125 = vset.pattern.permute.xlu0 %v1169_v9  ;;  %v412_v10 = vpack.c.bf16 %v406_v6, %v406_v6  ;;  %v408_v11 = vcombine.high %v405_v7, %v405_v7  ;;  %v410_v12 = vpack.c.bf16 %v405_v7, %v405_v7  ;;  %s1180_s18 = smov 111   ;;  %s1181_s19 = smov 96   ;;  %v1330_v56 = vsub.s32 1, %v431_v33 }
  0x16   : > { %658 = vperm.xlu0 %1125, %v550_v4   ;;  %1123 = vset.pattern.permute.xlu1 %v1168_v3  ;;  %v441_v37 = vrot.slane %v418_v36, %v440_v34  ;;  %v433_v50 = vrot.slane %v418_v36, %v1316_v49  ;;  %s1182_s20 = smov 97   ;;  %s1183_s21 = smov 95   ;;  %v883_v3 = vld [vmem:[%s1692_s4] sm:$0xff] }
  0x17   : > { %610 = vperm.xlu1 %1123, %v550_v4   ;;  %v463_v13 = vsel %vm455_vm1, %v412_v10, 0  ;;  %v411_v14 = vpack.c.bf16 %v408_v11, %v408_v11  ;;  %v457_v15 = vsel %vm455_vm1, %v410_v12, 0  ;;  %v437_v57 = vrot.slane %v418_v36, %v1330_v56  ;;  %v884_v11 = vld [vmem:[%s1692_s4 + $0x8] sm:$0xf] }
  0x18   : > { %1072 = vmatpush3.bf16.msra.mxu1 %v463_v13 }
  0x19   : > { %1059 = vmatprep.subr.msk.bf16.mxu0 %vm455_vm1, %v411_v14 }
  0x1a   : > { %1126 = vset.pattern.permute.xlu0 %v1170_v17  ;;  %466 = vmatpush1.bf16.msra.mxu0 %v457_v15 }
  0x1b   : > { %691 = vperm.xlu0 %1126, %v1255_v1   ;;  %1074 = vmatmul.mubr.msk.bf16.vlgmr.msra.gmra.mrb[0].mxu1 %vm451_vm2, %v415_v16 }
  0x1c   : > { %1124 = vset.pattern.permute.xlu1 %v1169_v9 }
  0x1d   : > { %654 = vperm.xlu1 %1124, %v1255_v1   ;;  %1060 = vmatmul.mubr.msk.bf16.vlgmr.msra.gmra.mrb[0].mxu0 %vm451_vm2, %v415_v16 }
  0x1f   : > { %1129 = vset.pattern.permute.xlu0 %v1171_v18 }
  0x20   : > { %728 = vperm.xlu0 %1129, %v550_v4  }
  0x21   : > { %1127 = vset.pattern.permute.xlu1 %v1170_v17 }
  0x22   : > { %695 = vperm.xlu1 %1127, %v550_v4  }
  0x24   : > { %1130 = vset.pattern.permute.xlu0 %v1172_v19 }
  0x25   : > { %761 = vperm.xlu0 %1130, %v1255_v1  }
  0x26   : > { %1128 = vset.pattern.permute.xlu1 %v1171_v18  ;;  %v1439_v18 = vand.u32 127, %v430_v31 }
  0x27   : > { %724 = vperm.xlu1 %1128, %v1255_v1  }
  0x28   : > { %vm567_vm3 = vcmp.lt.s32.totalorder %v1439_v18, 1  ;;  %vm858_vm4 = vcmp.lt.s32.totalorder %v1439_v18, 95  ;;  %vm681_vm5 = vcmp.lt.s32.totalorder %v1439_v18, 113  ;;  %vm633_vm6 = vcmp.lt.s32.totalorder %v1439_v18, 127 }
  0x29   : > { %1133 = vset.pattern.permute.xlu0 %v1173_v20  ;;  %vm751_vm7 = vcmp.lt.s32.totalorder %v1439_v18, 111  ;;  %vm718_vm8 = vcmp.lt.s32.totalorder %v1439_v18, 112  ;;  %vm788_vm9 = vcmp.lt.s32.totalorder %v1439_v18, 97  ;;  %vm825_vm10 = vcmp.lt.s32.totalorder %v1439_v18, 96 }
  0x2a   : > { %802 = vperm.xlu0 %1133, %v550_v4  }
  0x2b   : > { %1131 = vset.pattern.permute.xlu1 %v1172_v19  ;;  %v551_v19 = vld [vmem:[%s1695_s7] sm:$0x7] }
  0x2c   : > { %765 = vperm.xlu1 %1131, %v550_v4  }
  0x2e   : > { %1134 = vset.pattern.permute.xlu0 %v1174_v21 }
  0x2f   : > { %831 = vperm.xlu0 %1134, %v1255_v1  }
  0x30   : > { %1132 = vset.pattern.permute.xlu1 %v1173_v20 }
  0x31   : > { %798 = vperm.xlu1 %1132, %v1255_v1  }
  0x33   : > { %1137 = vset.pattern.permute.xlu0 %v1175_v22 }
  0x34   : > { %872 = vperm.xlu0 %1137, %v550_v4  }
  0x35   : > { %1135 = vset.pattern.permute.xlu1 %v1174_v21 }
  0x36   : > { %835 = vperm.xlu1 %1135, %v550_v4  }
  0x38   : > { %1138 = vset.pattern.permute.xlu0 %v1167_v2 }
  0x39   : > { %421 = vperm.xlu0 %1138, %v416_v23  }
  0x3a   : > { %1136 = vset.pattern.permute.xlu1 %v1175_v22  ;;  %v1447_v22 = vrot.slane %v551_v19, %v1316_v49 }
  0x3b   : > { %868 = vperm.xlu1 %1136, %v1255_v1  }
  0x3d   : > { %426 = vperm.xlu0 %1138, %v417_v24  }
  0x3f   : > { %1139 = vset.pattern.permute.xlu1 %v1167_v2 }
  0x41   : > { %589 = vperm.xlu0 %1138, %v1255_v1  }
  0x90   : > { %v1294_v25 = vpop.permute.xlu0 %606 }
  0x91   : > { %v1374_v63 = vpop.permute.xlu1 %594 }
  0x95   : > { %v1296_v26 = vpop.permute.xlu0 %658 }
  0x96   : > { %v1382_v1 = vpop.permute.xlu1 %610 }
  0x9a   : > { %v1298_v27 = vpop.permute.xlu0 %691 }
  0x9c   : > { %v1392_v2 = vpop.permute.xlu1 %654 }
  0x9f   : > { %v1300_v28 = vpop.permute.xlu0 %728 }
  0xa1   : > { %v1399_v4 = vpop.permute.xlu1 %695 }
  0xa4   : > { %v1302_v29 = vpop.permute.xlu0 %761 }
  0xa6   : > { %v1405_v5 = vpop.permute.xlu1 %724 }
  0xa9   : > { %v1304_v30 = vpop.permute.xlu0 %802 }
  0xab   : > { %v1409_v6 = vpop.permute.xlu1 %765 }
  0xae   : > { %v1306_v32 = vpop.permute.xlu0 %831 }
  0xb0   : > { %v1415_v7 = vpop.permute.xlu1 %798 }
  0xb3   : > { %v1309_v35 = vpop.permute.xlu0 %872 }
  0xb4   : > { %1699 = vst [vmem:[#allocation2_spill] sm:$0xff] %v1309_v35 }
  0xb5   : > { %v1419_v8 = vpop.permute.xlu1 %835 }
  0xb8   : > { %v422_v38 = vpop.permute.xlu0 %421 }
  0xb9   : > { %v447_v39 = vmul.f32 %v441_v37, %v422_v38  ;;  %v445_v52 = vmul.f32 %v433_v50, %v422_v38  ;;  %v446_v58 = vmul.f32 %v437_v57, %v422_v38 }
  0xba   : > { %v869_v9 = vpop.permute.xlu1 %868 }
  0xbc   : > { %v427_v51 = vpop.permute.xlu0 %426 }
  0xbd   : > { %v450_v53 = vmul.f32 %v441_v37, %v427_v51  ;;  %v448_v60 = vmul.f32 %v433_v50, %v427_v51  ;;  %v449_v62 = vmul.f32 %v437_v57, %v427_v51 }
  0xc0   : > { %v590_v10 = vpop.permute.xlu0 %589 }
  0xee   : > { %v542_v40 = vpop.f32.mrb[0].mxu1 }
  0xef   : > { %v543_v41 = vadd.f32 %v542_v40, %v447_v39  ;;  %v1075_v42 = vpop.f32.mrb[1].mxu1 }
  0xf0   : > { %v499_v43 = vpop.f32.mrb[0].mxu0  ;;  %v545_v44 = vpop.f32.mrb[2].mxu1 }
  0xf1   : > { %629 = vrot.lane.b32.xlu1 %v543_v41, %s1176_s14  ;;  %561 = vrot.lane.b32.xlu0 %v543_v41, %s1177_s15  ;;  %v501_v45 = vpop.f32.mrb[1].mxu0  ;;  %v1076_v46 = vpop.f32.mrb[3].mxu1  ;;  %v1325_v54 = vadd.f32 %v499_v43, %v445_v52  ;;  %v546_v55 = vadd.f32 %v545_v44, %v450_v53  ;;  %v552_v53 = vld [vmem:[%s1696_s8] sm:$0x7] }
  0xf2   : > { %v503_v47 = vpop.f32.mrb[2].mxu0  ;;  %v1342_v59 = vadd.f32 %v501_v45, %v446_v58 }
  0xf3   : > { %v505_v48 = vpop.f32.mrb[3].mxu0  ;;  %v1362_v61 = vadd.f32 %v503_v47, %v448_v60  ;;  %v613_v36 = vmul.f32 %v1294_v25, %v1325_v54 }
  0xf4   : > { %v1376_v0 = vadd.f32 %v505_v48, %v449_v62 }
  0xf5   : > { %714 = vrot.lane.b32.xlu1 %v543_v41, %s1178_s16  ;;  %677 = vrot.lane.b32.xlu0 %v543_v41, %s1179_s17 }
  0xf9   : > { %747 = vrot.lane.b32.xlu1 %v543_v41, %s1180_s18  ;;  %821 = vrot.lane.b32.xlu0 %v543_v41, %s1181_s19 }
  0xfd   : > { %784 = vrot.lane.b32.xlu1 %v543_v41, %s1182_s20  ;;  %854 = vrot.lane.b32.xlu0 %v543_v41, %s1183_s21 }
 0x101   : > { %631 = vrot.lane.b32.xlu0 %v546_v55, %s1176_s14  ;;  %553 = vrot.lane.b32.xlu1 %v1325_v54, %s1177_s15 }
 0x105   : > { %716 = vrot.lane.b32.xlu0 %v546_v55, %s1178_s16  ;;  %563 = vrot.lane.b32.xlu1 %v546_v55, %s1177_s15 }
 0x109   : > { %786 = vrot.lane.b32.xlu0 %v546_v55, %s1182_s20  ;;  %621 = vrot.lane.b32.xlu1 %v1325_v54, %s1176_s14 }
 0x10d   : > { %846 = vrot.lane.b32.xlu0 %v1325_v54, %s1183_s21  ;;  %669 = vrot.lane.b32.xlu1 %v1325_v54, %s1179_s17 }
 0x111   : > { %557 = vrot.lane.b32.xlu0 %v1342_v59, %s1177_s15  ;;  %679 = vrot.lane.b32.xlu1 %v546_v55, %s1179_s17 }
 0x115   : > { %673 = vrot.lane.b32.xlu0 %v1342_v59, %s1179_s17  ;;  %706 = vrot.lane.b32.xlu1 %v1325_v54, %s1178_s16 }
 0x119   : > { %743 = vrot.lane.b32.xlu0 %v1342_v59, %s1180_s18  ;;  %739 = vrot.lane.b32.xlu1 %v1325_v54, %s1180_s18 }
 0x11d   : > { %817 = vrot.lane.b32.xlu0 %v1342_v59, %s1181_s19  ;;  %749 = vrot.lane.b32.xlu1 %v546_v55, %s1180_s18 }
 0x121   : > { %850 = vrot.lane.b32.xlu0 %v1342_v59, %s1183_s21  ;;  %776 = vrot.lane.b32.xlu1 %v1325_v54, %s1182_s20 }
 0x125   : > { %623 = vrot.lane.b32.xlu0 %v1362_v61, %s1176_s14  ;;  %813 = vrot.lane.b32.xlu1 %v1325_v54, %s1181_s19  ;;  %v1474_v54 = vrot.slane %v552_v53, %v1316_v49 }
 0x129   : > { %708 = vrot.lane.b32.xlu0 %v1362_v61, %s1178_s16  ;;  %823 = vrot.lane.b32.xlu1 %v546_v55, %s1181_s19 }
 0x12d   : > { %778 = vrot.lane.b32.xlu0 %v1362_v61, %s1182_s20  ;;  %856 = vrot.lane.b32.xlu1 %v546_v55, %s1183_s21  ;;  %v1477_v55 = vrot.slane %v552_v53, %v1330_v56 }
 0x131   : > { %627 = vrot.lane.b32.xlu0 %v1376_v0, %s1176_s14  ;;  %625 = vrot.lane.b32.xlu1 %v1342_v59, %s1176_s14 }
 0x135   : > { %712 = vrot.lane.b32.xlu0 %v1376_v0, %s1178_s16  ;;  %710 = vrot.lane.b32.xlu1 %v1342_v59, %s1178_s16 }
 0x139   : > { %782 = vrot.lane.b32.xlu0 %v1376_v0, %s1182_s20  ;;  %780 = vrot.lane.b32.xlu1 %v1342_v59, %s1182_s20 }
 0x13d   : > { %887 = vperm.xlu0 %1138, %v883_v3   ;;  %555 = vrot.lane.b32.xlu1 %v1362_v61, %s1177_s15 }
 0x141   : > { %671 = vrot.lane.b32.xlu1 %v1362_v61, %s1179_s17 }
 0x145   : > { %741 = vrot.lane.b32.xlu1 %v1362_v61, %s1180_s18 }
 0x149   : > { %815 = vrot.lane.b32.xlu1 %v1362_v61, %s1181_s19 }
 0x14d   : > { %848 = vrot.lane.b32.xlu1 %v1362_v61, %s1183_s21 }
 0x151   : > { %559 = vrot.lane.b32.xlu1 %v1376_v0, %s1177_s15  ;;  %s1066_s15 = sshll.u32 %s1706_s30, 4 }
 0x155   : > { %675 = vrot.lane.b32.xlu1 %v1376_v0, %s1179_s17 }
 0x159   : > { %745 = vrot.lane.b32.xlu1 %v1376_v0, %s1180_s18  ;;  %s1614_s18 = scalar_lea.vmem %s1697_s9, %s1066_s15 }
 0x15d   : > { %819 = vrot.lane.b32.xlu1 %v1376_v0, %s1181_s19 }
 0x161   : > { %852 = vrot.lane.b32.xlu1 %v1376_v0, %s1183_s21 }
 0x163   : > { %v1430_v12 = vpop.permute.xlu1 %629  ;;  %v562_v13 = vpop.permute.xlu0 %561 }
 0x165   : > { %892 = vperm.xlu1 %1139, %v884_v11  }
 0x167   : > { %v1432_v14 = vpop.permute.xlu1 %714  ;;  %v678_v15 = vpop.permute.xlu0 %677 }
 0x16b   : > { %v1434_v16 = vpop.permute.xlu1 %747  ;;  %v1436_v17 = vpop.permute.xlu0 %821 }
 0x16f   : > { %v1444_v20 = vpop.permute.xlu1 %784  ;;  %v855_v21 = vpop.permute.xlu0 %854 }
 0x173   : > { %v632_v23 = vpop.permute.xlu0 %631  ;;  %v554_v24 = vpop.permute.xlu1 %553 }
 0x174   : > { %v570_v33 = vsel %vm567_vm3, %v562_v13, %v554_v24 }
 0x175   : > { %v583_v31 = vmul.f32 %v1447_v22, %v570_v33 }
 0x177   : > { %v597_v34 = vmul.f32 %v590_v10, %v583_v31  ;;  %v1455_v37 = vpop.permute.xlu0 %716  ;;  %v1457_v38 = vpop.permute.xlu1 %563 }
 0x179   : > { %v1459_v39 = vadd.f32 %v613_v36, %v597_v34  ;;  %v1492_v36 = vrot.slane %v551_v19, %v1330_v56 }
 0x17b   : > { %v1461_v40 = vpop.permute.xlu0 %786  ;;  %v622_v41 = vpop.permute.xlu1 %621 }
 0x17f   : > { %v847_v42 = vpop.permute.xlu0 %846  ;;  %v670_v43 = vpop.permute.xlu1 %669 }
 0x183   : > { %v558_v44 = vpop.permute.xlu0 %557  ;;  %v1463_v45 = vpop.permute.xlu1 %679 }
 0x187   : > { %v674_v46 = vpop.permute.xlu0 %673  ;;  %v707_v47 = vpop.permute.xlu1 %706 }
 0x188   : > { %v682_v19 = vsel %vm681_vm5, %v674_v46, %v678_v15 }
 0x18b   : > { %v744_v48 = vpop.permute.xlu0 %743  ;;  %v740_v50 = vpop.permute.xlu1 %739 }
 0x18f   : > { %v1465_v51 = vpop.permute.xlu0 %817  ;;  %v1467_v52 = vpop.permute.xlu1 %749 }
 0x193   : > { %v851_v57 = vpop.permute.xlu0 %850  ;;  %v777_v58 = vpop.permute.xlu1 %776 }
 0x194   : > { %v859_v60 = vsel %vm858_vm4, %v851_v57, %v855_v21  ;;  %v861_v62 = vsel %vm858_vm4, %v847_v42, %v851_v57  ;;  %v568_v42 = vsel %vm567_vm3, %v554_v24, %v558_v44 }
 0x195   : > { %v863_v3 = vmul.f32 %v861_v62, %v1474_v54  ;;  %v864_v11 = vmul.f32 %v859_v60, %v1477_v55  ;;  %v584_v57 = vmul.f32 %v1492_v36, %v568_v42  ;;  %v687_v42 = vmul.f32 %v682_v19, %v1492_v36 }
 0x197   : > { %v624_v13 = vpop.permute.xlu0 %623  ;;  %v1485_v33 = vpop.permute.xlu1 %813  ;;  %v1487_v31 = vmul.f32 %v869_v9, %v863_v3  ;;  %v1489_v34 = vmul.f32 %v869_v9, %v864_v11  ;;  %v684_v9 = vsel %vm681_vm5, %v670_v43, %v674_v46  ;;  %v598_v3 = vmul.f32 %v590_v10, %v584_v57 }
 0x198   : > { %v686_v11 = vmul.f32 %v684_v9, %v1447_v22  ;;  %v614_v10 = vmul.f32 %v1294_v25, %v1342_v59  ;;  %v754_v9 = vsel %vm751_vm7, %v740_v50, %v744_v48 }
 0x19b   : > { %v1494_v53 = vpop.permute.xlu0 %708  ;;  %v1496_v21 = vpop.permute.xlu1 %823 }
 0x19f   : > { %v1502_v60 = vpop.permute.xlu0 %778  ;;  %v1504_v62 = vpop.permute.xlu1 %856 }
 0x1a3   : > { %v628_v24 = vpop.permute.xlu0 %627  ;;  %v626_v44 = vpop.permute.xlu1 %625 }
 0x1a4   : > { %v1516_v35 = vsel %vm633_vm6, %v628_v24, %v632_v23  ;;  %v634_v43 = vsel %vm633_vm6, %v626_v44, %v1430_v12  ;;  %v636_v15 = vsel %vm633_vm6, %v622_v41, %v626_v44  ;;  %v752_v23 = vsel %vm751_vm7, %v744_v48, %v1434_v16 }
 0x1a5   : > { %v649_v46 = vmul.f32 %v1474_v54, %v636_v15  ;;  %v650_v57 = vmul.f32 %v1477_v55, %v634_v43  ;;  %v618_v12 = vadd.f32 %v614_v10, %v598_v3  ;;  %v698_v41 = vmul.f32 %v1298_v27, %v686_v11 }
 0x1a6   : > { %v699_v43 = vmul.f32 %v1298_v27, %v687_v42  ;;  %v756_v3 = vmul.f32 %v754_v9, %v1474_v54 }
 0x1a7   : > { %v661_v25 = vmul.f32 %v1392_v2, %v649_v46  ;;  %v662_v59 = vmul.f32 %v1392_v2, %v650_v57  ;;  %v1537_v19 = vpop.permute.xlu0 %712  ;;  %v711_v44 = vpop.permute.xlu1 %710  ;;  %v757_v2 = vmul.f32 %v752_v23, %v1477_v55 }
 0x1a8   : > { %v1544_v16 = vsel %vm718_vm8, %v1537_v19, %v1455_v37  ;;  %v719_v48 = vsel %vm718_vm8, %v711_v44, %v1432_v14  ;;  %v721_v50 = vsel %vm718_vm8, %v707_v47, %v711_v44  ;;  %v768_v23 = vmul.f32 %v1302_v29, %v756_v3 }
 0x1a9   : > { %v665_v11 = vadd.f32 %v661_v25, %v1459_v39  ;;  %v666_v27 = vadd.f32 %v662_v59, %v618_v12  ;;  %v731_v10 = vmul.f32 %v1405_v5, %v721_v50  ;;  %v732_v37 = vmul.f32 %v1405_v5, %v719_v48 }
 0x1aa   : > { %v769_v5 = vmul.f32 %v1302_v29, %v757_v2  ;;  %v615_v3 = vmul.f32 %v1382_v1, %v1362_v61 }
 0x1ab   : > { %v703_v42 = vadd.f32 %v699_v43, %v666_v27  ;;  %v702_v15 = vadd.f32 %v698_v41, %v665_v11  ;;  %v1556_v46 = vpop.permute.xlu0 %782  ;;  %v781_v57 = vpop.permute.xlu1 %780  ;;  %v637_v41 = vsel %vm633_vm6, %v624_v13, %v628_v24 }
 0x1ac   : > { %v1563_v14 = vsel %vm788_vm9, %v1556_v46, %v1461_v40  ;;  %v789_v39 = vsel %vm788_vm9, %v781_v57, %v1444_v20  ;;  %v791_v47 = vsel %vm788_vm9, %v777_v58, %v781_v57  ;;  %v826_v20 = vsel %vm825_vm10, %v1465_v51, %v1436_v17 }
 0x1ad   : > { %v735_v9 = vadd.f32 %v731_v10, %v702_v15  ;;  %v736_v12 = vadd.f32 %v732_v37, %v703_v42  ;;  %v793_v25 = vmul.f32 %v791_v47, %v1447_v22  ;;  %v794_v40 = vmul.f32 %v789_v39, %v1492_v36  ;;  %v899_v39 = vld [vmem:[%s1694_s6] sm:$0x3] }
 0x1ae   : > { %v828_v58 = vsel %vm825_vm10, %v1485_v33, %v1465_v51  ;;  %v651_v48 = vmul.f32 %v1474_v54, %v637_v41  ;;  %v839_v50 = vmul.f32 %v1306_v32, %v826_v20  ;;  %v1603_v47 = vrot.slane %v899_v39, %v1316_v49 }
 0x1af   : > { %v772_v29 = vadd.f32 %v768_v23, %v735_v9  ;;  %v773_v59 = vadd.f32 %v769_v5, %v736_v12  ;;  %v556_v44 = vpop.permute.xlu1 %555  ;;  %v805_v43 = vmul.f32 %v1415_v7, %v793_v25  ;;  %v806_v13 = vmul.f32 %v1415_v7, %v794_v40 }
 0x1b0   : > { %v571_v24 = vsel %vm567_vm3, %v1457_v38, %v556_v44  ;;  %v838_v2 = vmul.f32 %v1306_v32, %v828_v58  ;;  %v663_v38 = vmul.f32 %v1296_v26, %v651_v48  ;;  %v1606_v5 = vrot.slane %v899_v39, %v1330_v56 }
 0x1b1   : > { %v585_v17 = vmul.f32 %v1447_v22, %v571_v24  ;;  %v809_v51 = vadd.f32 %v805_v43, %v772_v29  ;;  %v810_v33 = vadd.f32 %v806_v13, %v773_v59  ;;  %v652_v56 = vmul.f32 %v1477_v55, %v1516_v35 }
 0x1b2   : > { %v616_v58 = vmul.f32 %v1382_v1, %v1376_v0  ;;  %v722_v29 = vsel %vm718_vm8, %v1494_v53, %v1537_v19  ;;  %v792_v0 = vsel %vm788_vm9, %v1502_v60, %v1556_v46  ;;  %v796_v60 = vmul.f32 %v1563_v14, %v1492_v36 }
 0x1b3   : > { %v599_v7 = vmul.f32 %v1374_v63, %v585_v17  ;;  %v672_v11 = vpop.permute.xlu1 %671  ;;  %v842_v27 = vadd.f32 %v838_v2, %v809_v51  ;;  %v843_v42 = vadd.f32 %v839_v50, %v810_v33  ;;  %v664_v13 = vmul.f32 %v1296_v26, %v652_v56 }
 0x1b4   : > { %v733_v19 = vmul.f32 %v1300_v28, %v722_v29  ;;  %v734_v26 = vmul.f32 %v1300_v28, %v1544_v16  ;;  %v795_v50 = vmul.f32 %v792_v0, %v1447_v22 }
 0x1b5   : > { %v619_v15 = vadd.f32 %v615_v3, %v599_v7  ;;  %v879_v10 = vadd.f32 %v1487_v31, %v842_v27  ;;  %v880_v37 = vadd.f32 %v1489_v34, %v843_v42  ;;  %v808_v27 = vmul.f32 %v1304_v30, %v796_v60 }
 0x1b7   : > { %v742_v57 = vpop.permute.xlu1 %741  ;;  %v667_v32 = vadd.f32 %v663_v38, %v619_v15 }
 0x1bb   : > { %v816_v61 = vpop.permute.xlu1 %815 }
 0x1bc   : > { %v888_v23 = vpop.permute.xlu0 %887 }
 0x1bd   : > { %v895_v9 = vadd.f32 %v888_v23, %v879_v10  ;;  %v896_v12 = vadd.f32 %v888_v23, %v880_v37 }
 0x1bf   : > { %v911_v31 = vmul.f32 %v1603_v47, %v895_v9  ;;  %v912_v34 = vmul.f32 %v1606_v5, %v896_v12  ;;  %v849_v41 = vpop.permute.xlu1 %848  ;;  %v1700_v9 = vld [vmem:[#allocation2_spill] sm:$0xff] }
 0x1c1   : > { %v1067_v49 = vpack.c.bf16 %v912_v34, %v911_v31 }
 0x1c3   : > { %927 = vst [vmem:[%s1614_s18] sm:$0xff] %v1067_v49  ;;  %v560_v25 = vpop.permute.xlu1 %559 }
 0x1c4   : > { %v569_v40 = vsel %vm567_vm3, %v556_v44, %v560_v25 }
 0x1c5   : > { %v586_v20 = vmul.f32 %v1492_v36, %v569_v40 }
 0x1c7   : > { %v600_v59 = vmul.f32 %v1374_v63, %v586_v20  ;;  %v676_v43 = vpop.permute.xlu1 %675 }
 0x1c8   : > { %v683_v35 = vsel %vm681_vm5, %v676_v43, %v1463_v45  ;;  %v685_v44 = vsel %vm681_vm5, %v672_v11, %v676_v43  ;;  %v807_v11 = vmul.f32 %v1304_v30, %v795_v50 }
 0x1c9   : > { %v620_v1 = vadd.f32 %v616_v58, %v600_v59  ;;  %v688_v53 = vmul.f32 %v685_v44, %v1447_v22  ;;  %v689_v63 = vmul.f32 %v683_v35, %v1492_v36 }
 0x1cb   : > { %v668_v24 = vadd.f32 %v664_v13, %v620_v1  ;;  %v700_v45 = vmul.f32 %v1399_v4, %v688_v53  ;;  %v701_v48 = vmul.f32 %v1399_v4, %v689_v63  ;;  %v746_v17 = vpop.permute.xlu1 %745 }
 0x1cc   : > { %v753_v46 = vsel %vm751_vm7, %v746_v17, %v1467_v52  ;;  %v755_v2 = vsel %vm751_vm7, %v742_v57, %v746_v17 }
 0x1cd   : > { %v704_v51 = vadd.f32 %v700_v45, %v667_v32  ;;  %v705_v28 = vadd.f32 %v701_v48, %v668_v24  ;;  %v758_v16 = vmul.f32 %v755_v2, %v1474_v54  ;;  %v759_v33 = vmul.f32 %v753_v46, %v1477_v55 }
 0x1cf   : > { %v737_v4 = vadd.f32 %v733_v19, %v704_v51  ;;  %v738_v3 = vadd.f32 %v734_v26, %v705_v28  ;;  %v770_v22 = vmul.f32 %v1409_v6, %v758_v16  ;;  %v771_v7 = vmul.f32 %v1409_v6, %v759_v33  ;;  %v820_v36 = vpop.permute.xlu1 %819 }
 0x1d0   : > { %v827_v52 = vsel %vm825_vm10, %v820_v36, %v1496_v21  ;;  %v829_v14 = vsel %vm825_vm10, %v816_v61, %v820_v36 }
 0x1d1   : > { %v774_v42 = vadd.f32 %v770_v22, %v737_v4  ;;  %v775_v38 = vadd.f32 %v771_v7, %v738_v3  ;;  %v840_v15 = vmul.f32 %v1419_v8, %v829_v14  ;;  %v841_v10 = vmul.f32 %v1419_v8, %v827_v52 }
 0x1d3   : > { %v853_v37 = vpop.permute.xlu1 %852  ;;  %v811_v6 = vadd.f32 %v807_v11, %v774_v42  ;;  %v812_v57 = vadd.f32 %v808_v27, %v775_v38 }
 0x1d4   : > { %v860_v21 = vsel %vm858_vm4, %v853_v37, %v1504_v62  ;;  %v862_v32 = vsel %vm858_vm4, %v849_v41, %v853_v37 }
 0x1d5   : > { %v865_v39 = vmul.f32 %v862_v32, %v1474_v54  ;;  %v866_v30 = vmul.f32 %v860_v21, %v1477_v55  ;;  %v844_v61 = vadd.f32 %v840_v15, %v811_v6  ;;  %v845_v23 = vadd.f32 %v841_v10, %v812_v57 }
 0x1d7   : > { %v877_v12 = vmul.f32 %v1700_v9, %v865_v39  ;;  %v878_v8 = vmul.f32 %v1700_v9, %v866_v30 }
 0x1d9   : > { %v881_v31 = vadd.f32 %v877_v12, %v844_v61  ;;  %v882_v34 = vadd.f32 %v878_v8, %v845_v23 }
 0x1e4   : > { %v893_v49 = vpop.permute.xlu1 %892 }
 0x1e5   : > { %v897_v25 = vadd.f32 %v893_v49, %v881_v31  ;;  %v898_v56 = vadd.f32 %v893_v49, %v882_v34 }
 0x1e7   : > { %v913_v62 = vmul.f32 %v1603_v47, %v897_v25  ;;  %v914_v18 = vmul.f32 %v1606_v5, %v898_v56 }
 0x1e9   : > { %v1068_v41 = vpack.c.bf16 %v914_v18, %v913_v62 }
 0x1eb   : > { %928 = vst [vmem:[%s1614_s18 + $0x8] sm:$0x33] %v1068_v41 }
 0x1ec PF: > { %s19_s11 = sadd.s32 1, %s1163_s11   ;;  %s1701_s30 = smov %s1159_s10 }
 0x1ed   : > { %p16_p5 = scmp.ge.s32.totalorder %s19_s11, 4   ;;  %s1702_s10 = smov %s1704_s12 }
 0x1ef   :  { %18 = sbr.rel (!%p16_p5) target bundleno = 2 (0x2), region = 92 }

</bundles_post_ra>
